<compile_context>
chip_gen: v5e
topology: v5e:2x2
jax: 0.10.0
libtpu: 0.0.40
codegen_flags: <defaults>
</compile_context>

<pallas_src>
import functools

import jax
import jax.numpy as jnp
from jax.experimental import pallas as pl
from jax.experimental.pallas import tpu as pltpu


def _ffn_kernel(x_ref, w13_ref, w2t_ref, o_ref, acc_ref, *, tk):
    k = pl.program_id(1)  # hidden-dim (reduction) axis, iterated innermost

    @pl.when(k == 0)
    def _():
        acc_ref[...] = jnp.zeros_like(acc_ref)

    x = x_ref[...]                                                 # (tm, D)
    # Fused gate/up projection: (tm, D) @ (D, 2*tk) -> (tm, 2*tk).
    gu = jnp.dot(x, w13_ref[...], preferred_element_type=jnp.float32)
    g = gu[:, :tk]                                                 # gate chunk
    u = gu[:, tk:]                                                 # up chunk
    h = (g * jax.lax.logistic(g)) * u                              # silu(g) * u

    # Down projection for this hidden chunk, accumulated in f32.
    acc_ref[...] += jnp.dot(h.astype(w2t_ref.dtype), w2t_ref[...],
                            preferred_element_type=jnp.float32)    # (tm, D)

    @pl.when(k == pl.num_programs(1) - 1)
    def _():
        o_ref[...] = acc_ref[...].astype(o_ref.dtype)


def feed_forward(x, w1, w2, w3, *, tm=256, tk=256, compute_dtype=None,
                 vmem_limit_bytes=64 * 1024 * 1024):
    """LLaMA FFN.  x: (M, D); w1, w3: (H, D); w2: (D, H).  Returns (M, D).

    compute_dtype: if given (e.g. jnp.bfloat16), x and the weights are cast
    before the kernel; the accumulator stays f32 and the output keeps x's
    original dtype.
    """
    M, D = x.shape
    H = w1.shape[0]
    out_dtype = x.dtype

    tm = min(tm, M)
    tk = min(tk, H)
    assert M % tm == 0 and (tm % 8 == 0 or tm == M), (M, tm)
    assert H % tk == 0 and tk % 128 == 0, (H, tk)

    if compute_dtype is not None:
        x = x.astype(compute_dtype)
        w1 = w1.astype(compute_dtype)
        w2 = w2.astype(compute_dtype)
        w3 = w3.astype(compute_dtype)

    # Pre-transpose / fuse the weights once, outside the kernel (in a real
    # model this is done at weight-load time, not per call):
    #   w13[:, 2k*tk : 2k*tk+tk]      = w1.T chunk k   (gate)
    #   w13[:, 2k*tk+tk : 2(k+1)*tk]  = w3.T chunk k   (up)
    g = w1.T.reshape(D, H // tk, tk)
    u = w3.T.reshape(D, H // tk, tk)
    w13 = jnp.concatenate([g, u], axis=-1).reshape(D, 2 * H)       # (D, 2H)
    w2t = w2.T                                                     # (H, D)

    grid = (M // tm, H // tk)

    return pl.pallas_call(
        functools.partial(_ffn_kernel, tk=tk),
        out_shape=jax.ShapeDtypeStruct((M, D), out_dtype),
        grid_spec=pltpu.PrefetchScalarGridSpec(
            num_scalar_prefetch=0,
            grid=grid,
            in_specs=[
                pl.BlockSpec((tm, D), lambda i, k: (i, 0)),        # x row tile
                pl.BlockSpec((D, 2 * tk), lambda i, k: (0, k)),    # fused [w1|w3]
                pl.BlockSpec((tk, D), lambda i, k: (k, 0)),        # w2.T chunk
            ],
            out_specs=pl.BlockSpec((tm, D), lambda i, k: (i, 0)),
            scratch_shapes=[pltpu.VMEM((tm, D), jnp.float32)],
        ),
        compiler_params=pltpu.CompilerParams(
            dimension_semantics=("parallel", "arbitrary"),
            vmem_limit_bytes=vmem_limit_bytes,
        ),
    )(x, w13, w2t)


def llama_hidden_dim(dim, multiple_of=256, ffn_dim_multiplier=None):
    hidden_dim = 4 * dim
    hidden_dim = int(2 * hidden_dim / 3)
    if ffn_dim_multiplier is not None:
        hidden_dim = int(ffn_dim_multiplier * hidden_dim)
    hidden_dim = multiple_of * ((hidden_dim + multiple_of - 1) // multiple_of)
    return hidden_dim


if __name__ == "__main__":
    # Small shapes consistent with the module: dim=128 -> hidden_dim=512.
    batch, seq, dim = 2, 8, 128
    hidden = llama_hidden_dim(dim, multiple_of=256)  # 512

    key = jax.random.PRNGKey(0)
    kx, k1, k2, k3 = jax.random.split(key, 4)

    x = jax.random.normal(kx, (batch, seq, dim), dtype=jnp.float32)
    # PyTorch nn.Linear weight convention: (out_features, in_features).
    w1 = jax.random.normal(k1, (hidden, dim), dtype=jnp.float32) * 0.02
    w2 = jax.random.normal(k2, (dim, hidden), dtype=jnp.float32) * 0.02
    w3 = jax.random.normal(k3, (hidden, dim), dtype=jnp.float32) * 0.02

    x2d = x.reshape(batch * seq, dim)
    ref = (jax.nn.silu(x2d @ w1.T) * (x2d @ w3.T)) @ w2.T

    # f32 path: tight correctness check.
    out_f32 = feed_forward(x2d, w1, w2, w3)
    jax.block_until_ready(out_f32)
    assert jnp.allclose(out_f32, ref, atol=1e-4, rtol=1e-4), "f32 mismatch vs reference"

    # bf16 compute path (production config): loose check.
    out_bf16 = feed_forward(x2d, w1, w2, w3, compute_dtype=jnp.bfloat16)
    jax.block_until_ready(out_bf16)
    assert jnp.allclose(out_bf16, ref, atol=5e-3, rtol=5e-2), "bf16 mismatch vs reference"

    print("KERNEL_OK")
</pallas_src>

<mosaic_0001>
module attributes {stable_mosaic.version = 11 : i64} {
  func.func @_ffn_kernel(%arg0: i32, %arg1: i32, %arg2: memref<16x128xf32, #tpu.memory_space<vmem>>, %arg3: memref<128x512xf32, #tpu.memory_space<vmem>>, %arg4: memref<256x128xf32, #tpu.memory_space<vmem>>, %arg5: memref<16x128xf32, #tpu.memory_space<vmem>>, %arg6: memref<16x128xf32, #tpu.memory_space<vmem>>) attributes {dimension_semantics = [#tpu.dimension_semantics<parallel>, #tpu.dimension_semantics<arbitrary>], iteration_bounds = array<i64: 1, 2>, scalar_prefetch = 0 : i64, scratch_operands = 1 : i64, tpu.core_type = #tpu.core_type<tc>, window_params = [{transform_indices = @transform_0, window_bounds = array<i64: 16, 128>}, {transform_indices = @transform_1, window_bounds = array<i64: 128, 512>}, {transform_indices = @transform_2, window_bounds = array<i64: 256, 128>}, {transform_indices = @transform_3, window_bounds = array<i64: 16, 128>}]} {
    %c0_i32 = arith.constant 0 : i32
    %0 = arith.cmpi eq, %arg1, %c0_i32 : i32
    %1 = arith.extui %0 : i1 to i32
    %c0_i32_0 = arith.constant 0 : i32
    %2 = arith.cmpi ne, %1, %c0_i32_0 : i32
    scf.if %2 {
      %cst_13 = arith.constant 0.000000e+00 : f32
      %23 = vector.broadcast %cst_13 : f32 to vector<16x128xf32>
      %c0_14 = arith.constant 0 : index
      %c0_15 = arith.constant 0 : index
      %24 = vector.load %arg6[%c0_14, %c0_15] : memref<16x128xf32, #tpu.memory_space<vmem>>, vector<16x128xf32>
      tpu.vector_store %arg6[%c0_14, %c0_15], %23 {strides = array<i32>} : memref<16x128xf32, #tpu.memory_space<vmem>>, vector<16x128xf32>,
    } else {
    }
    %c0 = arith.constant 0 : index
    %c0_1 = arith.constant 0 : index
    %3 = vector.load %arg2[%c0, %c0_1] : memref<16x128xf32, #tpu.memory_space<vmem>>, vector<16x128xf32>
    %c0_2 = arith.constant 0 : index
    %c0_3 = arith.constant 0 : index
    %4 = vector.load %arg3[%c0_2, %c0_3] : memref<128x512xf32, #tpu.memory_space<vmem>>, vector<128x512xf32>
    %cst = arith.constant dense<0.000000e+00> : vector<16x512xf32>
    %5 = tpu.matmul %3, %4, %cst {dimension_numbers = #tpu.dot_dimension_numbers<[1], [0], [0], [1], [0, 0, 1, 1], [], []>} : vector<16x128xf32>, vector<128x512xf32>, vector<16x512xf32> -> vector<16x512xf32>
    %6 = vector.extract_strided_slice %5 {offsets = [0, 0], sizes = [16, 256], strides = [1, 1]} : vector<16x512xf32> to vector<16x256xf32>
    %7 = vector.extract_strided_slice %5 {offsets = [0, 256], sizes = [16, 256], strides = [1, 1]} : vector<16x512xf32> to vector<16x256xf32>
    %8 = arith.negf %6 : vector<16x256xf32>
    %9 = math.exp %8 : vector<16x256xf32>
    %cst_4 = arith.constant 1.000000e+00 : f32
    %10 = vector.broadcast %cst_4 : f32 to vector<16x256xf32>
    %11 = arith.addf %10, %9 : vector<16x256xf32>
    %12 = arith.divf %10, %11 : vector<16x256xf32>
    %13 = arith.mulf %6, %12 : vector<16x256xf32>
    %14 = arith.mulf %13, %7 : vector<16x256xf32>
    %c0_5 = arith.constant 0 : index
    %c0_6 = arith.constant 0 : index
    %15 = vector.load %arg6[%c0_5, %c0_6] : memref<16x128xf32, #tpu.memory_space<vmem>>, vector<16x128xf32>
    %c0_7 = arith.constant 0 : index
    %c0_8 = arith.constant 0 : index
    %16 = vector.load %arg4[%c0_7, %c0_8] : memref<256x128xf32, #tpu.memory_space<vmem>>, vector<256x128xf32>
    %cst_9 = arith.constant dense<0.000000e+00> : vector<16x128xf32>
    %17 = tpu.matmul %14, %16, %cst_9 {dimension_numbers = #tpu.dot_dimension_numbers<[1], [0], [0], [1], [0, 0, 1, 1], [], []>} : vector<16x256xf32>, vector<256x128xf32>, vector<16x128xf32> -> vector<16x128xf32>
    %18 = arith.addf %15, %17 : vector<16x128xf32>
    %c0_10 = arith.constant 0 : index
    %c0_11 = arith.constant 0 : index
    %19 = vector.load %arg6[%c0_10, %c0_11] : memref<16x128xf32, #tpu.memory_space<vmem>>, vector<16x128xf32>
    tpu.vector_store %arg6[%c0_10, %c0_11], %18 {strides = array<i32>} : memref<16x128xf32, #tpu.memory_space<vmem>>, vector<16x128xf32>,
    %c1_i32 = arith.constant 1 : i32
    %20 = arith.cmpi eq, %arg1, %c1_i32 : i32
    %21 = arith.extui %20 : i1 to i32
    %c0_i32_12 = arith.constant 0 : i32
    %22 = arith.cmpi ne, %21, %c0_i32_12 : i32
    scf.if %22 {
      %c0_13 = arith.constant 0 : index
      %c0_14 = arith.constant 0 : index
      %23 = vector.load %arg6[%c0_13, %c0_14] : memref<16x128xf32, #tpu.memory_space<vmem>>, vector<16x128xf32>
      %c0_15 = arith.constant 0 : index
      %c0_16 = arith.constant 0 : index
      %24 = vector.load %arg5[%c0_15, %c0_16] : memref<16x128xf32, #tpu.memory_space<vmem>>, vector<16x128xf32>
      tpu.vector_store %arg5[%c0_15, %c0_16], %23 {strides = array<i32>} : memref<16x128xf32, #tpu.memory_space<vmem>>, vector<16x128xf32>,
    } else {
    }
    return
  }
  func.func @transform_0(%arg0: i32, %arg1: i32) -> (i32, i32) {
    %c0_i32 = arith.constant 0 : i32
    %c0_i32_0 = arith.constant 0 : i32
    return %arg0, %c0_i32 : i32, i32
  }
  func.func @transform_1(%arg0: i32, %arg1: i32) -> (i32, i32) {
    %c0_i32 = arith.constant 0 : i32
    %c0_i32_0 = arith.constant 0 : i32
    return %c0_i32, %arg1 : i32, i32
  }
  func.func @transform_2(%arg0: i32, %arg1: i32) -> (i32, i32) {
    %c0_i32 = arith.constant 0 : i32
    %c0_i32_0 = arith.constant 0 : i32
    return %arg1, %c0_i32 : i32, i32
  }
  func.func @transform_3(%arg0: i32, %arg1: i32) -> (i32, i32) {
    %c0_i32 = arith.constant 0 : i32
    %c0_i32_0 = arith.constant 0 : i32
    return %arg0, %c0_i32 : i32, i32
  }
}

</mosaic_0001>

<bundles_post_ra>
// kernel: tpu_custom_call.1
= control target key start
LH: loop header
LB: loop body
LE: loop exit
PB: predicated region body
PF: predicated region fallthrough
CT: control target
= control target key end

     0   :  { %8 = vsyncpa [#allocation4], 0  ;;  %s1331_s0 = inlined_call_operand.hbm [shape: f32[16,128], index: 0, kind: input, shape index: {}]   ;;  %s1332_s1 = inlined_call_operand.hbm [shape: f32[128,1024], index: 1, kind: input, shape index: {}]   ;;  %s1333_s2 = inlined_call_operand.hbm [shape: f32[512,128], index: 2, kind: input, shape index: {}]   ;;  %s1334_s3 = inlined_call_operand.hbm [shape: f32[16,128], index: 3, kind: output, shape index: {}]  }
   0x1   :  { %9 = vsyncpa [#allocation7], 0 }
   0x2   :  { %11 = vsyncpa [#allocation7 + $0x1], 0 }
   0x3   :  { %12 = vsyncpa [#allocation5], 0  ;;  %s1081_s12 = smov 0   ;;  %s1083_s13 = smov 0  }
   0x4   :  { %s1085_s14 = smov 0   ;;  %s1087_s15 = smov 0  }
   0x5   :  { %s1089_s16 = smov 0   ;;  %s1091_s17 = smov 0  }
   0x6 LB: > { %s27_s18 = sadd.s32 1, %s1045_s16  ;;  %s63_s19 = sadd.s32 1, %s1037_s14  ;;  %s1049_s17 = sphi %s1091_s17, %s18_s17   ;;  %s1045_s16 = sphi %s1089_s16, %s1343_s16   ;;  %s1041_s15 = sphi %s1087_s15, %s1342_s15   ;;  %s1037_s14 = sphi %s1085_s14, %s1341_s14   ;;  %s1033_s13 = sphi %s1083_s13, %s1340_s13   ;;  %s1029_s12 = sphi %s1081_s12, %s1339_s12  }
   0x7   : > { %p28_p0 = scmp.ge.s32.totalorder %s27_s18, 2  ;;  %p70_p1 = scmp.ne.s32.totalorder %s1037_s14, %s1033_s13 }
   0x8   : > { %p71_p2 = scmp.eq.s32.totalorder %s1049_s17, 0  ;;  %p795_p4 = scmp.lt.s32.totalorder %s1049_s17, 2 }
   0x9   : > { %s1345_s18 = smov (%p28_p0, %s27_s18), 0  ;;  %s169_s22 = sand.u32 1, %s1049_s17  }
   0xa   : > { %p1118_p3 = por %p71_p2, %p70_p1  ;;  %s60_s21 = ssub.s32 %s1045_s16, %s1345_s18 }
   0xb   : > { %p61_p5 = scmp.eq.s32.totalorder %s60_s21, 0  ;;  %s171_s23 = sand.u32 1, %s1037_s14  }
   0xc   : > { %s737_s24 = sshll.u32 %s1045_s16, 5  ;;  %s717_s26 = sshll.u32 %s171_s23, 9 }
   0xd   : > { %s1129_s25 = scalar_select %p61_p5, %s1037_s14, %s63_s19  }
   0xe   : > { %s178_s29 = scalar_lea.hbm %s1332_s1, %s737_s24  ;;  %s173_s4 = scalar_lea.vmem [#allocation6], %s717_s26 }
   0xf   : > { %s179_s30 = sshll.u32 %s178_s29, 4  ;;  %s181_s5 = sshll.u32 %s173_s4, 4  ;;  %s180_s30 = int_to_ptr.hbm [resolvable:$true] %s179_s30  ;;  %s182_s5 = int_to_ptr.vmem [resolvable:$true] %s181_s5 }
  0x10   : > { %p1138_p6 = pnand %p795_p4, %p1118_p3  ;;  %s1142_s7 = scalar_lea.sflag [#allocation7], %s169_s22 }
  0x11   : > { %s1051_s8 = smov 1024   ;;  %s1052_s9 = smov 512  }
  0x12   : > { %s1053_s10 = smov 32   ;;  %s1148_s11 = sadd.s32 4294967295, %s1049_s17  }
  0x13   : > { %790 = dma.hbm_to_vmem [thread:$0]  (!%p1138_p6), %s180_s30, 8192, %s182_s5, %s1142_s7, %s1051_s8, %s1052_s9, %s1053_s10  }
  0x14   : > { %p76_p7 = scmp.ne.s32.totalorder %s1033_s13, %s1029_s12  ;;  %p77_p8 = scmp.eq.s32.totalorder %s1148_s11, 0 }
  0x15   : > { %p714_p9 = scmp.ge.s32.totalorder %s1049_s17, 1  ;;  %p139_p10 = scmp.lt.s32.totalorder %s1049_s17, 3 }
  0x16   : > { %p1157_p11 = por %p77_p8, %p76_p7  ;;  %s153_s22 = sshll.u32 %s1331_s0, 4  ;;  %s154_s22 = int_to_ptr.hbm [resolvable:$true] %s153_s22 }
  0x17   : > { %p1164_p12 = pnand %p714_p9, %p139_p10  ;;  %s1054_s12 = smov [#allocation3]  }
  0x18   : > { %s155_s26 = sshll.u32 %s1054_s12, 4  ;;  %s720_s27 = sshll.u32 %s171_s23, 8  ;;  %s156_s26 = int_to_ptr.vmem [resolvable:$true] %s155_s26 }
  0x19   : > { %p783_p13 = pneg %p1164_p12  ;;  %s738_s28 = sshll.u32 %s1045_s16, 8 }
  0x1a   : > { %s200_s4 = scalar_lea.hbm %s1333_s2, %s738_s28  ;;  %s1055_s5 = smov 128  }
  0x1b   : > { %p784_p0 = pnand %p783_p13, %p77_p8  ;;  %s1056_s8 = smov 8  }
  0x1c   : > { %s201_s9 = sshll.u32 %s200_s4, 4  ;;  %s195_s10 = scalar_lea.vmem [#allocation8], %s720_s27  ;;  %s202_s9 = int_to_ptr.hbm [resolvable:$true] %s201_s9 }
  0x1d   : > { %786 = dma.hbm_to_vmem [thread:$0]  (!%p784_p0), %s154_s22, 256, %s156_s26, [#allocation4], %s1055_s5, %s1055_s5, %s1056_s8  }
  0x1e   : > { %s203_s20 = sshll.u32 %s195_s10, 4  ;;  %215 = sbr.rel (%p1164_p12) target bundleno = 402 (0x192), region = 32  ;;  %s204_s20 = int_to_ptr.vmem [resolvable:$true] %s203_s20 }
  0x1f   : > { %793 = dma.hbm_to_vmem [thread:$0]  (!%p1138_p6), %s202_s9, 4096, %s204_s20, %s1142_s7, %s1055_s5, %s1055_s5, %s1056_s8  }
  0x23   : > { %1016 = dma.done.wait (%p77_p8), [#allocation4], 256  }
  0x24   : > { %1018 = vsyncadd (%p77_p8), [#allocation4], 4294967040  ;;  %s222_s23 = sand.u32 1, %s1148_s11   ;;  %s224_s21 = sand.u32 1, %s1033_s13  }
  0x25   : > { %s725_s22 = sshll.u32 %s224_s21, 9  ;;  %s223_s12 = scalar_lea.sflag [#allocation7], %s222_s23 }
  0x26   : > { %s1187_s26 = scalar_lea.vmem [#allocation6], %s725_s22 }
  0x27   : > { %1020 = dma.done.wait (%p1157_p11), %s223_s12, 12288  }
  0x28   : > { %1022 = vsyncadd (%p1157_p11), %s223_s12, 4294955008  ;;  %s726_s6 = sshll.u32 %s224_s21, 8  ;;  %p727_p1 = scmp.ne.s32.totalorder %s1041_s15, 0 }
  0x29   : > { %s1193_s7 = scalar_lea.vmem [#allocation8], %s726_s6 }
  0x2a   : > { %267 = sbr.rel (%p727_p1) target bundleno = 50 (0x32), region = 48 }
  0x2f   : > { %v1057_v0 = vmov 0.0  }
  0x30   : > { %268 = vst [vmem:[#allocation2] sm:$0xff] %v1057_v0 }
  0x31   : > { %269 = vst [vmem:[#allocation2 + $0x8] sm:$0xff] %v1057_v0 }
  0x32 PF: > { %v332_v1 = vld [vmem:[%s1187_s26 + $0x1e0] sm:$0xff]  ;;  %v333_v2 = vld [vmem:[%s1187_s26 + $0x1e8] sm:$0xff]  ;;  %v334_v13 = vld [vmem:[%s1187_s26 + $0x1f0] sm:$0xff]  ;;  %p732_p2 = scmp.ne.s32.totalorder %s1041_s15, 1 }
  0x33   : > { %v328_v3 = vld [vmem:[%s1187_s26 + $0x1c0] sm:$0xff]  ;;  %336 = vmatpush.msra.mxu0 %v332_v1  ;;  %359 = vmatpush.msra.mxu1 %v333_v2  ;;  %v329_v4 = vld [vmem:[%s1187_s26 + $0x1c8] sm:$0xff]  ;;  %v335_v15 = vld [vmem:[%s1187_s26 + $0x1f8] sm:$0xff] }
  0x34   : > { %v324_v5 = vld [vmem:[%s1187_s26 + $0x1a0] sm:$0xff]  ;;  %v325_v6 = vld [vmem:[%s1187_s26 + $0x1a8] sm:$0xff]  ;;  %382 = vmatpush.msra.mxu2 %v334_v13  ;;  %405 = vmatpush.msra.mxu3 %v335_v15  ;;  %v330_v17 = vld [vmem:[%s1187_s26 + $0x1d0] sm:$0xff] }
  0x35   : > { %337 = vmatpush.msra.mxu0 %v328_v3  ;;  %360 = vmatpush.msra.mxu1 %v329_v4  ;;  %v320_v7 = vld [vmem:[%s1187_s26 + $0x180] sm:$0xff]  ;;  %v321_v8 = vld [vmem:[%s1187_s26 + $0x188] sm:$0xff]  ;;  %v331_v18 = vld [vmem:[%s1187_s26 + $0x1d8] sm:$0xff] }
  0x36   : > { %v316_v9 = vld [vmem:[%s1187_s26 + $0x160] sm:$0xff]  ;;  %v317_v10 = vld [vmem:[%s1187_s26 + $0x168] sm:$0xff]  ;;  %v326_v19 = vld [vmem:[%s1187_s26 + $0x1b0] sm:$0xff]  ;;  %383 = vmatpush.msra.mxu2 %v330_v17  ;;  %406 = vmatpush.msra.mxu3 %v331_v18 }
  0x37   : > { %338 = vmatpush.msra.mxu0 %v324_v5  ;;  %361 = vmatpush.msra.mxu1 %v325_v6  ;;  %v312_v11 = vld [vmem:[%s1187_s26 + $0x140] sm:$0xff]  ;;  %v313_v12 = vld [vmem:[%s1187_s26 + $0x148] sm:$0xff]  ;;  %v327_v20 = vld [vmem:[%s1187_s26 + $0x1b8] sm:$0xff] }
  0x38   : > { %v308_v14 = vld [vmem:[%s1187_s26 + $0x120] sm:$0xff]  ;;  %v309_v16 = vld [vmem:[%s1187_s26 + $0x128] sm:$0xff]  ;;  %v322_v23 = vld [vmem:[%s1187_s26 + $0x190] sm:$0xff]  ;;  %384 = vmatpush.msra.mxu2 %v326_v19  ;;  %407 = vmatpush.msra.mxu3 %v327_v20 }
  0x39   : > { %339 = vmatpush.msra.mxu0 %v320_v7  ;;  %362 = vmatpush.msra.mxu1 %v321_v8  ;;  %v304_v21 = vld [vmem:[%s1187_s26 + $0x100] sm:$0xff]  ;;  %v305_v22 = vld [vmem:[%s1187_s26 + $0x108] sm:$0xff]  ;;  %v323_v24 = vld [vmem:[%s1187_s26 + $0x198] sm:$0xff] }
  0x3a   : > { %v300_v25 = vld [vmem:[%s1187_s26 + $0xe0] sm:$0xff]  ;;  %v301_v26 = vld [vmem:[%s1187_s26 + $0xe8] sm:$0xff]  ;;  %v318_v27 = vld [vmem:[%s1187_s26 + $0x170] sm:$0xff]  ;;  %385 = vmatpush.msra.mxu2 %v322_v23  ;;  %408 = vmatpush.msra.mxu3 %v323_v24 }
  0x3b   : > { %340 = vmatpush.msra.mxu0 %v316_v9  ;;  %363 = vmatpush.msra.mxu1 %v317_v10  ;;  %v319_v28 = vld [vmem:[%s1187_s26 + $0x178] sm:$0xff]  ;;  %v296_v29 = vld [vmem:[%s1187_s26 + $0xc0] sm:$0xff]  ;;  %v297_v30 = vld [vmem:[%s1187_s26 + $0xc8] sm:$0xff] }
  0x3c   : > { %v314_v31 = vld [vmem:[%s1187_s26 + $0x150] sm:$0xff]  ;;  %v315_v32 = vld [vmem:[%s1187_s26 + $0x158] sm:$0xff]  ;;  %v292_v33 = vld [vmem:[%s1187_s26 + $0xa0] sm:$0xff]  ;;  %386 = vmatpush.msra.mxu2 %v318_v27  ;;  %409 = vmatpush.msra.mxu3 %v319_v28 }
  0x3d   : > { %341 = vmatpush.msra.mxu0 %v312_v11  ;;  %364 = vmatpush.msra.mxu1 %v313_v12  ;;  %v293_v34 = vld [vmem:[%s1187_s26 + $0xa8] sm:$0xff]  ;;  %v310_v35 = vld [vmem:[%s1187_s26 + $0x130] sm:$0xff]  ;;  %v311_v36 = vld [vmem:[%s1187_s26 + $0x138] sm:$0xff] }
  0x3e   : > { %v288_v37 = vld [vmem:[%s1187_s26 + $0x80] sm:$0xff]  ;;  %v289_v38 = vld [vmem:[%s1187_s26 + $0x88] sm:$0xff]  ;;  %387 = vmatpush.msra.mxu2 %v314_v31  ;;  %410 = vmatpush.msra.mxu3 %v315_v32  ;;  %v306_v39 = vld [vmem:[%s1187_s26 + $0x110] sm:$0xff] }
  0x3f   : > { %342 = vmatpush.msra.mxu0 %v308_v14  ;;  %365 = vmatpush.msra.mxu1 %v309_v16  ;;  %v307_v40 = vld [vmem:[%s1187_s26 + $0x118] sm:$0xff]  ;;  %v284_v41 = vld [vmem:[%s1187_s26 + $0x60] sm:$0xff]  ;;  %v285_v42 = vld [vmem:[%s1187_s26 + $0x68] sm:$0xff] }
  0x40   : > { %388 = vmatpush.msra.mxu2 %v310_v35  ;;  %411 = vmatpush.msra.mxu3 %v311_v36  ;;  %v302_v43 = vld [vmem:[%s1187_s26 + $0xf0] sm:$0xff]  ;;  %v303_v44 = vld [vmem:[%s1187_s26 + $0xf8] sm:$0xff]  ;;  %v280_v45 = vld [vmem:[%s1187_s26 + $0x40] sm:$0xff] }
  0x41   : > { %343 = vmatpush.msra.mxu0 %v304_v21  ;;  %366 = vmatpush.msra.mxu1 %v305_v22  ;;  %v281_v46 = vld [vmem:[%s1187_s26 + $0x48] sm:$0xff]  ;;  %v298_v47 = vld [vmem:[%s1187_s26 + $0xd0] sm:$0xff]  ;;  %v299_v48 = vld [vmem:[%s1187_s26 + $0xd8] sm:$0xff] }
  0x42   : > { %389 = vmatpush.msra.mxu2 %v306_v39  ;;  %412 = vmatpush.msra.mxu3 %v307_v40  ;;  %v276_v49 = vld [vmem:[%s1187_s26 + $0x20] sm:$0xff]  ;;  %v277_v50 = vld [vmem:[%s1187_s26 + $0x28] sm:$0xff]  ;;  %v294_v51 = vld [vmem:[%s1187_s26 + $0xb0] sm:$0xff] }
  0x43   : > { %344 = vmatpush.msra.mxu0 %v300_v25  ;;  %367 = vmatpush.msra.mxu1 %v301_v26  ;;  %v295_v52 = vld [vmem:[%s1187_s26 + $0xb8] sm:$0xff]  ;;  %v272_v53 = vld [vmem:[%s1187_s26] sm:$0xff]  ;;  %v273_v54 = vld [vmem:[%s1187_s26 + $0x8] sm:$0xff] }
  0x44   : > { %390 = vmatpush.msra.mxu2 %v302_v43  ;;  %413 = vmatpush.msra.mxu3 %v303_v44  ;;  %v270_v55 = vld [vmem:[#allocation3] sm:$0xff]  ;;  %v291_v57 = vld [vmem:[%s1187_s26 + $0x98] sm:$0xff]  ;;  %v527_v7 = vld [vmem:[%s1193_s7 + $0x68] sm:$0xff] }
  0x45   : > { %345 = vmatpush.msra.mxu0 %v296_v29  ;;  %368 = vmatpush.msra.mxu1 %v297_v30  ;;  %v290_v56 = vld [vmem:[%s1187_s26 + $0x90] sm:$0xff]  ;;  %v287_v59 = vld [vmem:[%s1187_s26 + $0x78] sm:$0xff]  ;;  %v543_v8 = vld [vmem:[%s1193_s7 + $0xe8] sm:$0xff] }
  0x46   : > { %391 = vmatpush.msra.mxu2 %v298_v47  ;;  %414 = vmatpush.msra.mxu3 %v299_v48  ;;  %v286_v58 = vld [vmem:[%s1187_s26 + $0x70] sm:$0xff]  ;;  %v283_v61 = vld [vmem:[%s1187_s26 + $0x58] sm:$0xff]  ;;  %v526_v9 = vld [vmem:[%s1193_s7 + $0x60] sm:$0xff] }
  0x47   : > { %346 = vmatpush.msra.mxu0 %v292_v33  ;;  %369 = vmatpush.msra.mxu1 %v293_v34  ;;  %v282_v60 = vld [vmem:[%s1187_s26 + $0x50] sm:$0xff]  ;;  %v279_v63 = vld [vmem:[%s1187_s26 + $0x38] sm:$0xff]  ;;  %v542_v10 = vld [vmem:[%s1193_s7 + $0xe0] sm:$0xff] }
  0x48   : > { %392 = vmatpush.msra.mxu2 %v294_v51  ;;  %415 = vmatpush.msra.mxu3 %v295_v52  ;;  %v278_v62 = vld [vmem:[%s1187_s26 + $0x30] sm:$0xff]  ;;  %v271_v0 = vld [vmem:[#allocation3 + $0x8] sm:$0xff]  ;;  %v523_v15 = vld [vmem:[%s1193_s7 + $0x48] sm:$0xff] }
  0x49   : > { %347 = vmatpush.msra.mxu0 %v288_v37  ;;  %370 = vmatpush.msra.mxu1 %v289_v38  ;;  %v274_v1 = vld [vmem:[%s1187_s26 + $0x10] sm:$0xff]  ;;  %v275_v2 = vld [vmem:[%s1187_s26 + $0x18] sm:$0xff]  ;;  %v539_v16 = vld [vmem:[%s1193_s7 + $0xc8] sm:$0xff] }
  0x4a   : > { %393 = vmatpush.msra.mxu2 %v290_v56  ;;  %416 = vmatpush.msra.mxu3 %v291_v57  ;;  %v529_v3 = vld [vmem:[%s1193_s7 + $0x78] sm:$0xff]  ;;  %v528_v5 = vld [vmem:[%s1193_s7 + $0x70] sm:$0xff]  ;;  %v522_v17 = vld [vmem:[%s1193_s7 + $0x40] sm:$0xff] }
  0x4b   : > { %348 = vmatpush.msra.mxu0 %v284_v41  ;;  %371 = vmatpush.msra.mxu1 %v285_v42  ;;  %v545_v4 = vld [vmem:[%s1193_s7 + $0xf8] sm:$0xff]  ;;  %v544_v6 = vld [vmem:[%s1193_s7 + $0xf0] sm:$0xff]  ;;  %v538_v18 = vld [vmem:[%s1193_s7 + $0xc0] sm:$0xff] }
  0x4c   : > { %394 = vmatpush.msra.mxu2 %v286_v58  ;;  %417 = vmatpush.msra.mxu3 %v287_v59  ;;  %v525_v11 = vld [vmem:[%s1193_s7 + $0x58] sm:$0xff]  ;;  %v524_v13 = vld [vmem:[%s1193_s7 + $0x50] sm:$0xff]  ;;  %v519_v23 = vld [vmem:[%s1193_s7 + $0x28] sm:$0xff] }
  0x4d   : > { %349 = vmatpush.msra.mxu0 %v280_v45  ;;  %372 = vmatpush.msra.mxu1 %v281_v46  ;;  %v541_v12 = vld [vmem:[%s1193_s7 + $0xd8] sm:$0xff]  ;;  %v540_v14 = vld [vmem:[%s1193_s7 + $0xd0] sm:$0xff]  ;;  %v535_v24 = vld [vmem:[%s1193_s7 + $0xa8] sm:$0xff] }
  0x4e   : > { %395 = vmatpush.msra.mxu2 %v282_v60  ;;  %418 = vmatpush.msra.mxu3 %v283_v61  ;;  %v521_v19 = vld [vmem:[%s1193_s7 + $0x38] sm:$0xff]  ;;  %v520_v21 = vld [vmem:[%s1193_s7 + $0x30] sm:$0xff]  ;;  %v518_v25 = vld [vmem:[%s1193_s7 + $0x20] sm:$0xff] }
  0x4f   : > { %350 = vmatpush.msra.mxu0 %v276_v49  ;;  %373 = vmatpush.msra.mxu1 %v277_v50  ;;  %v537_v20 = vld [vmem:[%s1193_s7 + $0xb8] sm:$0xff]  ;;  %v536_v22 = vld [vmem:[%s1193_s7 + $0xb0] sm:$0xff]  ;;  %v534_v26 = vld [vmem:[%s1193_s7 + $0xa0] sm:$0xff] }
  0x50   : > { %396 = vmatpush.msra.mxu2 %v278_v62  ;;  %419 = vmatpush.msra.mxu3 %v279_v63  ;;  %v517_v27 = vld [vmem:[%s1193_s7 + $0x18] sm:$0xff]  ;;  %v516_v29 = vld [vmem:[%s1193_s7 + $0x10] sm:$0xff]  ;;  %v515_v35 = vld [vmem:[%s1193_s7 + $0x8] sm:$0xff] }
  0x51   : > { %351 = vmatpush.msra.mxu0 %v272_v53  ;;  %374 = vmatpush.msra.mxu1 %v273_v54  ;;  %v533_v28 = vld [vmem:[%s1193_s7 + $0x98] sm:$0xff]  ;;  %v532_v30 = vld [vmem:[%s1193_s7 + $0x90] sm:$0xff]  ;;  %v531_v36 = vld [vmem:[%s1193_s7 + $0x88] sm:$0xff] }
  0x52   : > { %352 = vmatmul.f32.vlgmr.msra.gmra.mxu0 %v270_v55  ;;  %375 = vmatmul.f32.vlgmr.msra.gmra.mxu1 %v270_v55  ;;  %v514_v37 = vld [vmem:[%s1193_s7] sm:$0xff] }
  0x53   : > { %397 = vmatpush.msra.mxu2 %v274_v1  ;;  %420 = vmatpush.msra.mxu3 %v275_v2  ;;  %v530_v38 = vld [vmem:[%s1193_s7 + $0x80] sm:$0xff] }
  0x54   : > { %398 = vmatmul.f32.vlgmr.msra.gmra.mxu2 %v270_v55  ;;  %421 = vmatmul.f32.vlgmr.msra.gmra.mxu3 %v270_v55 }
  0x55   : > { %546 = vmatpush.msrb.mxu0 %v529_v3  ;;  %569 = vmatpush.msrb.mxu1 %v545_v4 }
  0x56   : > { %739 = vmatpush.msrb.mxu2 %v529_v3  ;;  %755 = vmatpush.msrb.mxu3 %v545_v4 }
  0x57   : > { %547 = vmatpush.msrb.mxu0 %v528_v5  ;;  %570 = vmatpush.msrb.mxu1 %v544_v6 }
  0x58   : > { %740 = vmatpush.msrb.mxu2 %v528_v5  ;;  %756 = vmatpush.msrb.mxu3 %v544_v6 }
  0x59   : > { %548 = vmatpush.msrb.mxu0 %v527_v7  ;;  %571 = vmatpush.msrb.mxu1 %v543_v8 }
  0x5a   : > { %355 = vmatmul.f32.gmra.mxu0 %v271_v0  ;;  %378 = vmatmul.f32.gmra.mxu1 %v271_v0 }
  0x5b   : > { %741 = vmatpush.msrb.mxu2 %v527_v7  ;;  %757 = vmatpush.msrb.mxu3 %v543_v8 }
  0x5c   : > { %401 = vmatmul.f32.gmra.mxu2 %v271_v0  ;;  %424 = vmatmul.f32.gmra.mxu3 %v271_v0 }
  0x5d   : > { %549 = vmatpush.msrb.mxu0 %v526_v9  ;;  %572 = vmatpush.msrb.mxu1 %v542_v10 }
  0x5e   : > { %742 = vmatpush.msrb.mxu2 %v526_v9  ;;  %758 = vmatpush.msrb.mxu3 %v542_v10 }
  0x5f   : > { %550 = vmatpush.msrb.mxu0 %v525_v11  ;;  %573 = vmatpush.msrb.mxu1 %v541_v12 }
  0x60   : > { %743 = vmatpush.msrb.mxu2 %v525_v11  ;;  %759 = vmatpush.msrb.mxu3 %v541_v12 }
  0x61   : > { %551 = vmatpush.msrb.mxu0 %v524_v13  ;;  %574 = vmatpush.msrb.mxu1 %v540_v14 }
  0x62   : > { %744 = vmatpush.msrb.mxu2 %v524_v13  ;;  %760 = vmatpush.msrb.mxu3 %v540_v14 }
  0x63   : > { %552 = vmatpush.msrb.mxu0 %v523_v15  ;;  %575 = vmatpush.msrb.mxu1 %v539_v16 }
  0x64   : > { %745 = vmatpush.msrb.mxu2 %v523_v15  ;;  %761 = vmatpush.msrb.mxu3 %v539_v16 }
  0x65   : > { %553 = vmatpush.msrb.mxu0 %v522_v17  ;;  %576 = vmatpush.msrb.mxu1 %v538_v18 }
  0x66   : > { %746 = vmatpush.msrb.mxu2 %v522_v17  ;;  %762 = vmatpush.msrb.mxu3 %v538_v18 }
  0x67   : > { %554 = vmatpush.msrb.mxu0 %v521_v19  ;;  %577 = vmatpush.msrb.mxu1 %v537_v20 }
  0x68   : > { %747 = vmatpush.msrb.mxu2 %v521_v19  ;;  %763 = vmatpush.msrb.mxu3 %v537_v20 }
  0x69   : > { %555 = vmatpush.msrb.mxu0 %v520_v21  ;;  %578 = vmatpush.msrb.mxu1 %v536_v22 }
  0x6a   : > { %748 = vmatpush.msrb.mxu2 %v520_v21  ;;  %764 = vmatpush.msrb.mxu3 %v536_v22 }
  0x6b   : > { %556 = vmatpush.msrb.mxu0 %v519_v23  ;;  %579 = vmatpush.msrb.mxu1 %v535_v24 }
  0x6c   : > { %749 = vmatpush.msrb.mxu2 %v519_v23  ;;  %765 = vmatpush.msrb.mxu3 %v535_v24 }
  0x6d   : > { %557 = vmatpush.msrb.mxu0 %v518_v25  ;;  %580 = vmatpush.msrb.mxu1 %v534_v26 }
  0x6e   : > { %750 = vmatpush.msrb.mxu2 %v518_v25  ;;  %766 = vmatpush.msrb.mxu3 %v534_v26 }
  0x6f   : > { %558 = vmatpush.msrb.mxu0 %v517_v27  ;;  %581 = vmatpush.msrb.mxu1 %v533_v28 }
  0x70   : > { %751 = vmatpush.msrb.mxu2 %v517_v27  ;;  %767 = vmatpush.msrb.mxu3 %v533_v28 }
  0x71   : > { %559 = vmatpush.msrb.mxu0 %v516_v29  ;;  %582 = vmatpush.msrb.mxu1 %v532_v30 }
  0x72   : > { %752 = vmatpush.msrb.mxu2 %v516_v29  ;;  %768 = vmatpush.msrb.mxu3 %v532_v30 }
  0x73   : > { %560 = vmatpush.msrb.mxu0 %v515_v35  ;;  %583 = vmatpush.msrb.mxu1 %v531_v36 }
  0x74   : > { %753 = vmatpush.msrb.mxu2 %v515_v35  ;;  %769 = vmatpush.msrb.mxu3 %v531_v36 }
  0x75   : > { %561 = vmatpush.msrb.mxu0 %v514_v37  ;;  %584 = vmatpush.msrb.mxu1 %v530_v38 }
  0x76   : > { %754 = vmatpush.msrb.mxu2 %v514_v37  ;;  %770 = vmatpush.msrb.mxu3 %v530_v38 }
  0xcf   : > { %v1288_v31 = vpop.f32.mrf.mxu0  ;;  %v1290_v32 = vpop.f32.mrf.mxu1 }
  0xd0   : > { %v728_v33 = vmul.f32 -1.442695, %v1288_v31  ;;  %v729_v34 = vmul.f32 -1.442695, %v1290_v32 }
  0xd2   : > { %857 = vpow2.f32 %v728_v33 }
  0xd3   : > { %859 = vpow2.f32 %v729_v34 }
  0xd7   : > { %v1298_v39 = vpop.f32.mrf.mxu0  ;;  %v1300_v40 = vpop.f32.mrf.mxu1 }
  0xd8   : > { %v858_v41 = vpop.eup %857  ;;  %v730_v42 = vmul.f32 -1.442695, %v1298_v39  ;;  %v731_v45 = vmul.f32 -1.442695, %v1300_v40  ;;  %v399_v3 = vpop.f32.mrf.mxu2 }
  0xd9   : > { %v860_v43 = vpop.eup %859  ;;  %v440_v44 = vadd.f32 1.0, %v858_v41  ;;  %v422_v13 = vpop.f32.mrf.mxu3 }
  0xda   : > { %v441_v46 = vadd.f32 1.0, %v860_v43  ;;  %861 = vpow2.f32 %v730_v42  ;;  %v512_v42 = vld [vmem:[#allocation2] sm:$0xff] }
  0xdb   : > { %863 = vrcp.f32 %v440_v44  ;;  %v453_v56 = vand.u32 2147483647, %v440_v44  ;;  %v455_v57 = vand.u32 2147483648, %v440_v44  ;;  %vm449_vm2 = vweird.f32 %v440_v44 }
  0xdc   : > { %865 = vrcp.f32 %v441_v46  ;;  %v470_v60 = vand.u32 2147483648, %v441_v46  ;;  %v468_v62 = vand.u32 2147483647, %v441_v46  ;;  %vm464_vm4 = vweird.f32 %v441_v46 }
  0xdd   : > { %867 = vpow2.f32 %v731_v45  ;;  %v456_v1 = vor.u32 1.1754944e-38, %v455_v57  ;;  %vm454_vm5 = vcmp.eq.f32.partialorder %v453_v56, 8.507059e+37 }
  0xde   : > { %v471_v5 = vor.u32 1.1754944e-38, %v470_v60  ;;  %vm469_vm7 = vcmp.eq.f32.partialorder %v468_v62, 8.507059e+37 }
  0xe0   : > { %v862_v47 = vpop.eup %861  ;;  %v402_v30 = vpop.f32.mrf.mxu2 }
  0xe1   : > { %v864_v48 = vpop.eup %863  ;;  %v442_v49 = vadd.f32 1.0, %v862_v47  ;;  %v425_v36 = vpop.f32.mrf.mxu3 }
  0xe2   : > { %v866_v50 = vpop.eup %865  ;;  %v445_v51 = vmul.f32 %v864_v48, %v440_v44  ;;  %vm450_vm0 = vweird.f32 %v864_v48 }
  0xe3   : > { %v868_v52 = vpop.eup %867  ;;  %v460_v53 = vmul.f32 %v866_v50, %v441_v46  ;;  %869 = vrcp.f32 %v442_v49  ;;  %vm465_vm1 = vweird.f32 %v866_v50  ;;  %vm451_vm3 = vmor %vm449_vm2, %vm450_vm0  ;;  %v485_v15 = vand.u32 2147483648, %v442_v49 }
  0xe4   : > { %v446_v54 = vsub.f32 1.0, %v445_v51  ;;  %v443_v55 = vadd.f32 1.0, %v868_v52  ;;  %vm466_vm6 = vmor %vm464_vm4, %vm465_vm1  ;;  %v483_v18 = vand.u32 2147483647, %v442_v49  ;;  %vm479_vm9 = vweird.f32 %v442_v49 }
  0xe5   : > { %v461_v58 = vsub.f32 1.0, %v460_v53  ;;  %v486_v24 = vor.u32 1.1754944e-38, %v485_v15 }
  0xe6   : > { %v447_v59 = vmul.f32 %v864_v48, %v446_v54  ;;  %871 = vrcp.f32 %v443_v55  ;;  %v500_v23 = vand.u32 2147483648, %v443_v55  ;;  %v498_v26 = vand.u32 2147483647, %v443_v55 }
  0xe7   : > { %v462_v61 = vmul.f32 %v866_v50, %v461_v58  ;;  %vm484_vm12 = vcmp.eq.f32.partialorder %v483_v18, 8.507059e+37  ;;  %vm494_vm13 = vweird.f32 %v443_v55 }
  0xe8   : > { %v448_v63 = vadd.f32 %v864_v48, %v447_v59  ;;  %vm499_vm15 = vcmp.eq.f32.partialorder %v498_v26, 8.507059e+37 }
  0xe9   : > { %v870_v0 = vpop.eup %869  ;;  %v463_v2 = vadd.f32 %v866_v50, %v462_v61 }
  0xea   : > { %v452_v4 = vsel %vm451_vm3, %v864_v48, %v448_v63  ;;  %v475_v6 = vmul.f32 %v870_v0, %v442_v49  ;;  %vm480_vm8 = vweird.f32 %v870_v0 }
  0xeb   : > { %v457_v7 = vsel %vm454_vm5, %v456_v1, %v452_v4  ;;  %v467_v8 = vsel %vm466_vm6, %v866_v50, %v463_v2  ;;  %vm481_vm10 = vmor %vm479_vm9, %vm480_vm8 }
  0xec   : > { %v872_v9 = vpop.eup %871  ;;  %v504_v10 = vmul.f32 %v457_v7, %v1288_v31  ;;  %v472_v11 = vsel %vm469_vm7, %v471_v5, %v467_v8  ;;  %v476_v12 = vsub.f32 1.0, %v475_v6 }
  0xed   : > { %v505_v14 = vmul.f32 %v472_v11, %v1290_v32  ;;  %v490_v16 = vmul.f32 %v872_v9, %v443_v55  ;;  %vm495_vm11 = vweird.f32 %v872_v9  ;;  %v501_v32 = vor.u32 1.1754944e-38, %v500_v23 }
  0xee   : > { %v477_v17 = vmul.f32 %v870_v0, %v476_v12  ;;  %v508_v19 = vmul.f32 %v504_v10, %v399_v3  ;;  %vm496_vm14 = vmor %vm494_vm13, %vm495_vm11 }
  0xef   : > { %v491_v20 = vsub.f32 1.0, %v490_v16  ;;  %v509_v21 = vmul.f32 %v505_v14, %v422_v13 }
  0xf0   : > { %v478_v22 = vadd.f32 %v870_v0, %v477_v17  ;;  %562 = vmatmul.f32.vlgmr.msrb.gmra.mxu0 %v508_v19 }
  0xf1   : > { %v492_v25 = vmul.f32 %v872_v9, %v491_v20  ;;  %585 = vmatmul.f32.vlgmr.msrb.gmra.mxu1 %v509_v21 }
  0xf2   : > { %v482_v27 = vsel %vm481_vm10, %v870_v0, %v478_v22 }
  0xf3   : > { %v487_v28 = vsel %vm484_vm12, %v486_v24, %v482_v27  ;;  %v493_v29 = vadd.f32 %v872_v9, %v492_v25 }
  0xf4   : > { %v506_v31 = vmul.f32 %v487_v28, %v1298_v39  ;;  %v513_v39 = vld [vmem:[#allocation2 + $0x8] sm:$0xff] }
  0xf5   : > { %v497_v33 = vsel %vm496_vm14, %v872_v9, %v493_v29 }
  0xf6   : > { %v502_v34 = vsel %vm499_vm15, %v501_v32, %v497_v33  ;;  %v510_v35 = vmul.f32 %v506_v31, %v402_v30 }
  0xf7   : > { %v507_v37 = vmul.f32 %v502_v34, %v1300_v40 }
  0xf8   : > { %565 = vmatmul.f32.vlgmr.msrb.gmra.mxu2 %v510_v35 }
  0xf9   : > { %v511_v38 = vmul.f32 %v507_v37, %v425_v36 }
  0xfb   : > { %588 = vmatmul.f32.vlgmr.msrb.gmra.mxu3 %v511_v38 }
 0x16d   : > { %v563_v41 = vpop.f32.mrf.mxu0 }
 0x16e   : > { %v586_v43 = vpop.f32.mrf.mxu1 }
 0x16f   : > { %v587_v44 = vadd.f32 %v586_v43, %v563_v41 }
 0x171   : > { %v592_v45 = vadd.f32 %v587_v44, %v512_v42 }
 0x173   : > { %594 = vst [vmem:[#allocation2] sm:$0xff] %v592_v45 }
 0x17b   : > { %v566_v46 = vpop.f32.mrf.mxu2 }
 0x17e   : > { %v589_v47 = vpop.f32.mrf.mxu3 }
 0x17f   : > { %v590_v48 = vadd.f32 %v589_v47, %v566_v46  ;;  %599 = sbr.rel (%p732_p2) target bundleno = 396 (0x18c), region = 52 }
 0x181   : > { %v593_v49 = vadd.f32 %v590_v48, %v513_v39 }
 0x183   : > { %595 = vst [vmem:[#allocation2 + $0x8] sm:$0xff] %v593_v49 }
 0x184   : > { %v600_v50 = vld [vmem:[#allocation2] sm:$0xff] }
 0x185   : > { %602 = vst [vmem:[#allocation9] sm:$0xff] %v600_v50 }
 0x18a   : > { %v601_v40 = vld [vmem:[#allocation2 + $0x8] sm:$0xff] }
 0x18b   : > { %603 = vst [vmem:[#allocation9 + $0x8] sm:$0xff] %v601_v40 }
 0x18c PF: > { %p797_p3 = scmp.eq.s32.totalorder %s1148_s11, 1  ;;  %s614_s27 = sshll.u32 %s1334_s3, 4  ;;  %s615_s27 = int_to_ptr.hbm [resolvable:$true] %s614_s27 }
 0x18d   : > { %s1058_s28 = smov [#allocation9]   ;;  %s1059_s30 = smov 128  }
 0x18e   : > { %s612_s29 = sshll.u32 %s1058_s28, 4  ;;  %s1060_s4 = smov 8   ;;  %s613_s29 = int_to_ptr.vmem [resolvable:$true] %s612_s29 }
 0x18f   : > { %780 = dma.vmem_to_hbm [thread:$0]  (%p797_p3), %s613_s29, 256, %s615_s27, [#allocation5], %s1059_s30, %s1059_s30, %s1060_s4  }
 0x190   : > { %1024 = dma.done.wait (%p797_p3), [#allocation5], 256  }
 0x191   : > { %1026 = vsyncadd (%p797_p3), [#allocation5], 4294967040 }
 0x192 PF: > { %s18_s17 = sadd.s32 1, %s1049_s17   ;;  %s1339_s12 = smov %s1033_s13 }
 0x193   : > { %p15_p4 = scmp.ge.s32.totalorder %s18_s17, 4   ;;  %s1340_s13 = smov %s1037_s14 }
 0x194   : > { %s1341_s14 = smov %s1129_s25  ;;  %s1342_s15 = smov %s1045_s16 }
 0x195   : > { %s1343_s16 = smov %s1345_s18  ;;  %17 = sbr.rel (!%p15_p4) target bundleno = 6 (0x6), region = 95 }
 0x19a   :  { %631 = vsyncpa [#allocation4], 1 }
 0x19b   :  { %633 = vsyncpa [#allocation4 + $0x1], 1 }
 0x19c   :  { %634 = vsyncpa [#allocation7], 1 }
 0x19d   :  { %636 = vsyncpa [#allocation7 + $0x1], 1 }
 0x19e   :  { %637 = vsyncpa [#allocation5], 1 }
 0x19f   :  { %639 = vsyncpa [#allocation5 + $0x1], 1 }

</bundles_post_ra>
